<compile_context>
chip_gen: v7x
topology: tpu7x:2x2x1
jax: 0.10.0
libtpu: 0.0.40
codegen_flags: <defaults>
</compile_context>

<pallas_src>
import math

import jax
import jax.numpy as jnp
from jax.experimental import pallas as pl
from jax.experimental.pallas import tpu as pltpu


# ---------------------------------------------------------------------------
# Kernel
# ---------------------------------------------------------------------------
def _pe_add_kernel(x_ref, pe_ref, o_ref):
    # x_ref / o_ref: (TB, TS, TD) tiles; pe_ref: (1, TS, TD) shared tile.
    # Promote on the VMEM tile (matches torch's x + pe type promotion); the
    # leading dim-1 of pe broadcasts over the TB batch slabs -> plain VPU adds.
    o_ref[...] = x_ref[...].astype(o_ref.dtype) + pe_ref[...].astype(o_ref.dtype)


# ---------------------------------------------------------------------------
# Tiling
# ---------------------------------------------------------------------------
_BLOCK_ELEMS = 1 << 20        # ~4 MiB per f32 x block: amortizes ~0.35 us/step overhead
_FORCE_SPLIT_ELEMS = 1 << 18  # arrays above ~1 MiB f32 get >= 2 grid steps (v7x 2 TCs)


def _fold_factor(S, D):
    """Fold f consecutive sequence positions into the lane axis when D is lane-sparse.

    Both x and pe are reshaped [*, S, D] -> [*, S//f, f*D]; this is a contiguous
    relabeling of the same trailing axes, so the broadcast add is unchanged.
    """
    if D % 128 == 0:
        return 1
    for f in range(2, S + 1):                   # make lanes a multiple of 128
        if S % f == 0 and (f * D) % 128 == 0:
            return f
    if D < 128:
        for f in range(2, S + 1):               # at least reach >= 128 lanes
            if S % f == 0 and f * D >= 128:
                return f
    return 1


def _pick_tiles(B, S, D):
    """Pick (TB, TS, TD) and grid (ns, nd, nb) for the [B, S, D] view."""
    # Lane axis (d_model, possibly with folded seq positions).
    TD = D
    nd = 1
    if 8 * D > _BLOCK_ELEMS:                    # pathological: split lanes
        TD = max(128, (_BLOCK_ELEMS // 8) // 128 * 128)
        nd = pl.cdiv(D, TD)

    # Sublane axis (sequence). Multiple of 8 or the full extent -> always legal;
    # non-dividing tiles rely on cdiv + Pallas edge masking.
    ts_cap = max(8, (_BLOCK_ELEMS // TD) // 8 * 8)
    TS = S if S <= ts_cap else ts_cap
    ns = pl.cdiv(S, TS)

    # Batch axis (leading dim, no alignment constraint).
    TB = max(1, min(B, _BLOCK_ELEMS // max(1, TS * TD)))
    nb = pl.cdiv(B, TB)

    # Guarantee >= 2 parallel grid steps for non-tiny arrays so both v7x
    # TensorCores stream and input/output DMAs actually overlap.
    if ns * nd * nb == 1 and B * S * D >= _FORCE_SPLIT_ELEMS:
        if B >= 2:
            TB = (B + 1) // 2
            nb = pl.cdiv(B, TB)
        elif S >= 16:
            TS = max(8, ((S // 2) + 7) // 8 * 8)
            ns = pl.cdiv(S, TS)

    return TB, TS, TD, (ns, nd, nb)


# ---------------------------------------------------------------------------
# Module "buffer" construction (mirrors the PyTorch __init__)
# ---------------------------------------------------------------------------
def make_sinusoidal_pe(d_model, max_seq_len, frequency=10000.0, dtype=jnp.float32):
    position = jnp.arange(max_seq_len, dtype=jnp.float32)[:, None]             # [L, 1]
    div_term = jnp.exp(
        jnp.arange(0, d_model, 2, dtype=jnp.float32) * (-math.log(frequency) / d_model)
    )                                                                           # [D/2]
    pe = jnp.zeros((1, max_seq_len, d_model), dtype=jnp.float32)
    pe = pe.at[0, :, 0::2].set(jnp.sin(position * div_term))
    pe = pe.at[0, :, 1::2].set(jnp.cos(position * div_term))
    # Pre-cast once at init (e.g. bf16) if the model runs reduced-precision activations.
    return pe.astype(dtype)


# ---------------------------------------------------------------------------
# Forward wrapper (== AbsolutePositionalEncoding.forward)
# ---------------------------------------------------------------------------
def absolute_positional_encoding(x, pe, *, out_dtype=None, donate_x=False):
    """x: [B, S, D]; pe: [1, max_seq_len, D] sinusoidal buffer. Returns x + pe."""
    B, S, D = x.shape
    # Faithful to `x + self.pe[:x.size(0)]`: pe[:B] == pe (leading dim is 1) and
    # the broadcast requires S == max_seq_len, exactly as in the PyTorch module.
    assert pe.shape == (1, S, D), "broadcast requires seq_len == max_seq_len"

    if out_dtype is None:
        out_dtype = jnp.promote_types(x.dtype, pe.dtype)
    out_dtype = jnp.dtype(out_dtype)

    # Contiguous lane-folding view shared by x and pe (layout plumbing, no HBM copy).
    f = _fold_factor(S, D)
    S2, D2 = S // f, D * f
    x3 = x.reshape(B, S2, D2)
    pe3 = pe.reshape(1, S2, D2)

    TB, TS, TD, grid = _pick_tiles(B, S2, D2)

    # Raise the scoped-VMEM limit only when the double-buffered footprint needs it
    # (large blocks on big arrays); 48 MiB clears the 16/32 MiB defaults and stays
    # under v7x's 64 MiB physical VMEM.
    blk = TB * TS * TD
    footprint = 2 * (blk * x.dtype.itemsize            # x (double-buffered)
                     + blk * out_dtype.itemsize        # out
                     + TS * TD * pe.dtype.itemsize)    # pe
    params = {"dimension_semantics": ("parallel", "parallel", "parallel")}
    if footprint > (12 << 20):
        params["vmem_limit_bytes"] = 48 * 1024 * 1024

    aliases = {}
    if donate_x and out_dtype == x.dtype:
        aliases = {0: 0}   # reuse x's HBM buffer for the output (donate x at call site)

    # Grid order (seq, d, batch): batch innermost so pe's block index is constant
    # along the inner loop and its tile stays resident in VMEM.
    out3 = pl.pallas_call(
        _pe_add_kernel,
        out_shape=jax.ShapeDtypeStruct((B, S2, D2), out_dtype),
        grid_spec=pltpu.PrefetchScalarGridSpec(
            num_scalar_prefetch=0,
            grid=grid,
            in_specs=[
                pl.BlockSpec((TB, TS, TD), lambda s, d, b: (b, s, d)),   # x tile
                pl.BlockSpec((1, TS, TD), lambda s, d, b: (0, s, d)),    # shared pe tile
            ],
            out_specs=pl.BlockSpec((TB, TS, TD), lambda s, d, b: (b, s, d)),
        ),
        compiler_params=pltpu.CompilerParams(**params),
        input_output_aliases=aliases,
    )(x3, pe3)

    # Dropout(p=0.0) is the identity at module defaults.
    # TODO(synk): p > 0 would need pltpu.prng_seed / pltpu.prng_random_bits in-kernel.
    return out3.reshape(B, S, D)


if __name__ == "__main__":
    key = jax.random.PRNGKey(0)

    # Small shapes consistent with the module's forward (seq_len == max_seq_len).
    batch, seq_len, d_model = 2, 8, 32
    x = jax.random.normal(key, (batch, seq_len, d_model), dtype=jnp.float32)
    pe = make_sinusoidal_pe(d_model, seq_len)

    out = absolute_positional_encoding(x, pe)
    jax.block_until_ready(out)

    ref = x + pe[:batch]                      # pe[:B] == pe since pe.shape[0] == 1
    assert out.shape == (batch, seq_len, d_model)
    assert jnp.allclose(out, ref, atol=1e-6), "mismatch vs reference (small shape)"

    # Second, slightly larger shape that exercises the multi-step grid
    # (forced >= 2 parallel steps, batch-innermost pe residency).
    b2, s2, d2 = 8, 128, 1024
    x2 = jax.random.normal(jax.random.PRNGKey(1), (b2, s2, d2), dtype=jnp.float32)
    pe2 = make_sinusoidal_pe(d2, s2)
    out2 = absolute_positional_encoding(x2, pe2)
    jax.block_until_ready(out2)
    ref2 = x2 + pe2[:b2]
    assert out2.shape == (b2, s2, d2)
    assert jnp.allclose(out2, ref2, atol=1e-6), "mismatch vs reference (multi-block)"

    print("KERNEL_OK")
</pallas_src>

<mosaic_0001>
module attributes {stable_mosaic.version = 11 : i64} {
  func.func @_pe_add_kernel(%arg0: i32, %arg1: i32, %arg2: i32, %arg3: memref<2x2x128xf32, #tpu.memory_space<vmem>>, %arg4: memref<1x2x128xf32, #tpu.memory_space<vmem>>, %arg5: memref<2x2x128xf32, #tpu.memory_space<vmem>>) attributes {dimension_semantics = [#tpu.dimension_semantics<parallel>, #tpu.dimension_semantics<parallel>, #tpu.dimension_semantics<parallel>], iteration_bounds = array<i64: 1, 1, 1>, scalar_prefetch = 0 : i64, scratch_operands = 0 : i64, tpu.core_type = #tpu.core_type<tc>, window_params = [{transform_indices = @transform_0, window_bounds = array<i64: 2, 2, 128>}, {transform_indices = @transform_1, window_bounds = array<i64: 1, 2, 128>}, {transform_indices = @transform_2, window_bounds = array<i64: 2, 2, 128>}]} {
    %c0 = arith.constant 0 : index
    %c0_0 = arith.constant 0 : index
    %c0_1 = arith.constant 0 : index
    %0 = vector.load %arg3[%c0, %c0_0, %c0_1] : memref<2x2x128xf32, #tpu.memory_space<vmem>>, vector<2x2x128xf32>
    %c0_2 = arith.constant 0 : index
    %c0_3 = arith.constant 0 : index
    %c0_4 = arith.constant 0 : index
    %1 = vector.load %arg4[%c0_2, %c0_3, %c0_4] : memref<1x2x128xf32, #tpu.memory_space<vmem>>, vector<1x2x128xf32>
    %2 = vector.broadcast %1 : vector<1x2x128xf32> to vector<2x2x128xf32>
    %3 = arith.addf %0, %2 : vector<2x2x128xf32>
    %c0_5 = arith.constant 0 : index
    %c0_6 = arith.constant 0 : index
    %c0_7 = arith.constant 0 : index
    %4 = vector.load %arg5[%c0_5, %c0_6, %c0_7] : memref<2x2x128xf32, #tpu.memory_space<vmem>>, vector<2x2x128xf32>
    tpu.vector_store %arg5[%c0_5, %c0_6, %c0_7], %3 {strides = array<i32>} : memref<2x2x128xf32, #tpu.memory_space<vmem>>, vector<2x2x128xf32>,
    return
  }
  func.func @transform_0(%arg0: i32, %arg1: i32, %arg2: i32) -> (i32, i32, i32) {
    %c0_i32 = arith.constant 0 : i32
    return %arg2, %arg0, %arg1 : i32, i32, i32
  }
  func.func @transform_1(%arg0: i32, %arg1: i32, %arg2: i32) -> (i32, i32, i32) {
    %c0_i32 = arith.constant 0 : i32
    %c0_i32_0 = arith.constant 0 : i32
    return %c0_i32, %arg0, %arg1 : i32, i32, i32
  }
  func.func @transform_2(%arg0: i32, %arg1: i32, %arg2: i32) -> (i32, i32, i32) {
    %c0_i32 = arith.constant 0 : i32
    return %arg2, %arg0, %arg1 : i32, i32, i32
  }
}

</mosaic_0001>

<bundles_post_ra>
// kernel: tpu_custom_call.1
= control target key start
LH: loop header
LB: loop body
LE: loop exit
PB: predicated region body
PF: predicated region fallthrough
CT: control target
= control target key end

     0   :  { %7 = vsyncpa [#allocation3], 0  ;;  %s154_s0 = inlined_call_operand.hbm [shape: f32[2,2,128], index: 0, kind: input, shape index: {}]   ;;  %s155_s1 = inlined_call_operand.vmem [shape: f32[1,2,128], index: 1, kind: input, shape index: {}]   ;;  %s156_s2 = inlined_call_operand.hbm [shape: f32[2,2,128], index: 2, kind: output, shape index: {}]  }
   0x1   :  { %8 = vsyncpa [#allocation4], 0  ;;  %s102_s9 = smov [#allocation2]   ;;  %s54_s13 = scalar_lea.hbm %s154_s0, 64 }
   0x2   :  { %s14_s10 = sshll.u32 %s102_s9, 4  ;;  %p55_p0 = scmp.ne.s32.totalorder %s154_s0, %s54_s13  ;;  %s15_s10 = int_to_ptr.vmem [resolvable:$true] %s14_s10 }
   0x3   :  { %p58_p1 = scmp.lt.u32.totalorder %s54_s13, %s154_s0 }
   0x5   :  { %p60_p2 = pnand %p58_p1, %p55_p0 }
   0x7   :  { %63 = shalt.err (!%p60_p2)
}
   0x8   :  { %s64_s18 = scalar_lea.vmem %s15_s10, 64  ;;  %p69_p4 = scmp.lt.s32.totalorder %s15_s10, %s15_s10 }
   0x9   :  { %p65_p3 = scmp.ne.s32.totalorder %s15_s10, %s64_s18  ;;  %p70_p5 = scmp.lt.s32.totalorder %s64_s18, %s64_s18 }
   0xb   :  { %p71_p6 = por %p70_p5, %p69_p4 }
   0xd   :  { %p72_p7 = pnand %p71_p6, %p65_p3 }
   0xf   :  { %75 = shalt.err (!%p72_p7)
}
  0x10   :  { %s103_s19 = smov 32   ;;  %s104_s20 = smov 2  }
  0x11   :  { %20 = dma.hbm_to_vmem [thread:$0]  %s154_s0, 64, %s15_s10, [#allocation3], %s103_s19, %s103_s19, %s104_s20  }
  0x12   :  { %98 = dma.done.wait [#allocation3], 64  }
  0x13   :  { %99 = vsyncadd [#allocation3], 4294967232  ;;  %s105_s23 = smov [#allocation5]   ;;  %v26_v0 = vld [vmem:[#allocation2] sm:$0x3] }
  0x14   :  { %s38_s24 = sshll.u32 %s105_s23, 4  ;;  %v28_v1 = vld [vmem:[%s155_s1] sm:$0x3]  ;;  %v27_v2 = vld [vmem:[#allocation2 + $0x2] sm:$0x3]  ;;  %s39_s24 = int_to_ptr.vmem [resolvable:$true] %s38_s24 }
  0x15   :  { %v29_v3 = vadd.f32 %v28_v1, %v26_v0  ;;  %v30_v4 = vadd.f32 %v28_v1, %v27_v2  ;;  %s76_s27 = scalar_lea.vmem %s39_s24, 64  ;;  %p81_p9 = scmp.lt.s32.totalorder %s39_s24, %s39_s24 }
  0x16   :  { %p77_p8 = scmp.ne.s32.totalorder %s39_s24, %s76_s27  ;;  %p82_p10 = scmp.lt.s32.totalorder %s76_s27, %s76_s27 }
  0x17   :  { %31 = vst [vmem:[#allocation5] sm:$0x3] %v29_v3  ;;  %32 = vst [vmem:[#allocation5 + $0x2] sm:$0x3] %v30_v4 }
  0x18   :  { %p83_p11 = por %p82_p10, %p81_p9 }
  0x1a   :  { %p84_p12 = pnand %p83_p11, %p77_p8 }
  0x1c   :  { %87 = shalt.err (!%p84_p12)
}
  0x1d   :  { %s88_s29 = scalar_lea.hbm %s156_s2, 64 }
  0x1e   :  { %p89_p13 = scmp.ne.s32.totalorder %s156_s2, %s88_s29  ;;  %p92_p0 = scmp.lt.u32.totalorder %s88_s29, %s156_s2 }
  0x20   :  { %p94_p1 = pnand %p92_p0, %p89_p13 }
  0x22   :  { %97 = shalt.err (!%p94_p1)
}
  0x23   :  { %44 = dma.vmem_to_hbm [thread:$0]  %s39_s24, 64, %s156_s2, [#allocation4], %s103_s19, %s103_s19, %s104_s20  }
  0x24   :  { %100 = dma.done.wait [#allocation4], 64  }
  0x25   :  { %101 = vsyncadd [#allocation4], 4294967232 }
  0x26   :  { %48 = vsyncpa [#allocation3], 1 }
  0x27   :  { %49 = vsyncpa [#allocation4], 1 }

</bundles_post_ra>
